<compile_context>
chip_gen: v7x
topology: tpu7x:2x2x1
jax: 0.10.0
libtpu: 0.0.40
codegen_flags: <defaults>
</compile_context>

<pallas_src>
import math

import jax
import jax.numpy as jnp
from jax import lax
from jax.experimental import pallas as pl
from jax.experimental.pallas import tpu as pltpu

PARAM_DTYPE = jnp.bfloat16   # storage dtype for the packed parameter slab
_ROW_GRAN = 16               # bf16 sublane-tile granularity for section offsets


def _round_up(x, m):
    return (x + m - 1) // m * m


# --------------------------------------------------------------------------
# Parameter packing: 13 arrays -> one (rows, W) slab + static layout metadata.
# --------------------------------------------------------------------------
def pack_ppo_params(params):
    n_states, h1 = params["aw1"].shape
    h2 = params["aw2"].shape[1]
    n_actions = params["aw3"].shape[1]

    out_w = _round_up(max(2 * n_actions + 1, 128), 128)   # [mean|std|value|pad]
    width = _round_up(max(2 * h1, 2 * h2, out_w), 128)

    r_w1 = 0
    r_b1 = r_w1 + _round_up(n_states, _ROW_GRAN)
    r_w2 = r_b1 + _ROW_GRAN
    r_b2 = r_w2 + _round_up(2 * h1, _ROW_GRAN)
    r_w3 = r_b2 + _ROW_GRAN
    r_b3 = r_w3 + _round_up(2 * h2, _ROW_GRAN)
    r_ls = r_b3 + _ROW_GRAN
    rows = r_ls + _ROW_GRAN

    slab = jnp.zeros((rows, width), jnp.float32)
    # layer 1 (fused along output axis): [actor | critic]
    slab = slab.at[r_w1:r_w1 + n_states, 0:h1].set(params["aw1"])
    slab = slab.at[r_w1:r_w1 + n_states, h1:2 * h1].set(params["cw1"])
    slab = slab.at[r_b1, 0:h1].set(params["ab1"].reshape(-1))
    slab = slab.at[r_b1, h1:2 * h1].set(params["cb1"].reshape(-1))
    # layer 2 (block-diagonal)
    slab = slab.at[r_w2:r_w2 + h1, 0:h2].set(params["aw2"])
    slab = slab.at[r_w2 + h1:r_w2 + 2 * h1, h2:2 * h2].set(params["cw2"])
    slab = slab.at[r_b2, 0:h2].set(params["ab2"].reshape(-1))
    slab = slab.at[r_b2, h2:2 * h2].set(params["cb2"].reshape(-1))
    # layer 3: actor half -> mean columns, critic half -> value column
    slab = slab.at[r_w3:r_w3 + h2, 0:n_actions].set(params["aw3"])
    slab = slab.at[r_w3 + h2:r_w3 + 2 * h2,
                   2 * n_actions:2 * n_actions + 1].set(params["cw3"])
    slab = slab.at[r_b3, 0:n_actions].set(params["ab3"].reshape(-1))
    slab = slab.at[r_b3, 2 * n_actions:2 * n_actions + 1].set(
        params["cb3"].reshape(-1))
    # log_std stored pre-shifted into the std column range
    slab = slab.at[r_ls, n_actions:2 * n_actions].set(params["log_std"].reshape(-1))

    slab = slab.astype(PARAM_DTYPE)
    meta = dict(n_states=n_states, n_actions=n_actions, h1=h1, h2=h2,
                out_w=out_w, width=width,
                r_w1=r_w1, r_b1=r_b1, r_w2=r_w2, r_b2=r_b2,
                r_w3=r_w3, r_b3=r_b3, r_ls=r_ls)
    return slab, meta


# --------------------------------------------------------------------------
# Kernel: one batch tile, whole parameter slab resident in VMEM.
# --------------------------------------------------------------------------
def _make_kernel(meta):
    ns, na = meta["n_states"], meta["n_actions"]
    h1, h2, out_w = meta["h1"], meta["h2"], meta["out_w"]
    r_w1, r_b1 = meta["r_w1"], meta["r_b1"]
    r_w2, r_b2 = meta["r_w2"], meta["r_b2"]
    r_w3, r_b3, r_ls = meta["r_w3"], meta["r_b3"], meta["r_ls"]

    def kernel(x_ref, p_ref, o_ref):
        x = x_ref[...]  # (tile_b, n_states) f32

        # fused layer 1: (tile_b, 2*h1) = [actor | critic]
        w1 = p_ref[r_w1:r_w1 + ns, 0:2 * h1].astype(jnp.float32)
        b1 = p_ref[r_b1:r_b1 + 1, 0:2 * h1].astype(jnp.float32)
        h = jnp.maximum(
            jnp.dot(x, w1, preferred_element_type=jnp.float32) + b1, 0.0)

        # fused (block-diagonal) layer 2: (tile_b, 2*h2)
        w2 = p_ref[r_w2:r_w2 + 2 * h1, 0:2 * h2].astype(jnp.float32)
        b2 = p_ref[r_b2:r_b2 + 1, 0:2 * h2].astype(jnp.float32)
        h = jnp.maximum(
            jnp.dot(h, w2, preferred_element_type=jnp.float32) + b2, 0.0)

        # fused layer 3 -> lane-dense slab [mean | std | value | pad]
        w3 = p_ref[r_w3:r_w3 + 2 * h2, 0:out_w].astype(jnp.float32)
        b3 = p_ref[r_b3:r_b3 + 1, 0:out_w].astype(jnp.float32)
        ls = p_ref[r_ls:r_ls + 1, 0:out_w].astype(jnp.float32)

        col = lax.broadcasted_iota(jnp.int32, (1, out_w), 1)
        std_row = jnp.where((col >= na) & (col < 2 * na), jnp.exp(ls), 0.0)

        out = jnp.dot(h, w3, preferred_element_type=jnp.float32) + b3 + std_row
        o_ref[...] = out.astype(o_ref.dtype)

    return kernel


# --------------------------------------------------------------------------
# Wrapper: batch-tiled grid (parallel), params resident, slice outputs.
# --------------------------------------------------------------------------
def ppo_forward(x, slab, meta, *, tile_b=None):
    """x: (B, n_states) f32.  Returns (mean, std, value)."""
    B, n_states = x.shape
    na, out_w = meta["n_actions"], meta["out_w"]

    if tile_b is None:
        tile_b = B if B <= 512 else 512
    if B % tile_b != 0:
        tile_b = B  # fallback: single whole-batch tile
    grid = (B // tile_b,)

    kernel = _make_kernel(meta)
    out = pl.pallas_call(
        kernel,
        out_shape=jax.ShapeDtypeStruct((B, out_w), jnp.float32),
        grid=grid,
        in_specs=[
            pl.BlockSpec((tile_b, n_states), lambda i: (i, 0)),
            # constant block index -> slab DMA'd once, stays VMEM-resident
            pl.BlockSpec(slab.shape, lambda i: (0, 0)),
        ],
        out_specs=pl.BlockSpec((tile_b, out_w), lambda i: (i, 0)),
        compiler_params=pltpu.CompilerParams(
            dimension_semantics=("parallel",)),
    )(x, slab)

    mean = out[:, :na]
    std = out[:, na:2 * na]
    value = out[:, 2 * na:2 * na + 1]
    return mean, std, value


# --------------------------------------------------------------------------
# Init + pure-JAX reference (uses the same bf16-rounded parameters).
# --------------------------------------------------------------------------
def init_ppo_params(key, n_states, n_actions, num_h1=128, num_h2=64):
    def xavier(k, fan_in, fan_out):
        std = math.sqrt(2.0 / (fan_in + fan_out))
        return std * jax.random.normal(k, (fan_in, fan_out), dtype=jnp.float32)

    ks = jax.random.split(key, 6)
    return {
        "aw1": xavier(ks[0], n_states, num_h1), "ab1": jnp.zeros((1, num_h1), jnp.float32),
        "aw2": xavier(ks[1], num_h1, num_h2),   "ab2": jnp.zeros((1, num_h2), jnp.float32),
        "aw3": xavier(ks[2], num_h2, n_actions),"ab3": jnp.zeros((1, n_actions), jnp.float32),
        "log_std": jnp.zeros((1, n_actions), jnp.float32),
        "cw1": xavier(ks[3], n_states, num_h1), "cb1": jnp.zeros((1, num_h1), jnp.float32),
        "cw2": xavier(ks[4], num_h1, num_h2),   "cb2": jnp.zeros((1, num_h2), jnp.float32),
        "cw3": xavier(ks[5], num_h2, 1),        "cb3": jnp.zeros((1, 1), jnp.float32),
    }


def ppo_forward_ref(x, p):
    c = lambda a: a.astype(PARAM_DTYPE).astype(jnp.float32)  # match slab rounding
    h = jnp.maximum(x @ c(p["aw1"]) + c(p["ab1"]), 0.0)
    h = jnp.maximum(h @ c(p["aw2"]) + c(p["ab2"]), 0.0)
    mean = h @ c(p["aw3"]) + c(p["ab3"])
    std = jnp.broadcast_to(jnp.exp(c(p["log_std"])), mean.shape)
    hc = jnp.maximum(x @ c(p["cw1"]) + c(p["cb1"]), 0.0)
    hc = jnp.maximum(hc @ c(p["cw2"]) + c(p["cb2"]), 0.0)
    value = hc @ c(p["cw3"]) + c(p["cb3"])
    return mean, std, value


if __name__ == "__main__":
    key = jax.random.PRNGKey(0)
    k_param, k_x, k_x2 = jax.random.split(key, 3)

    B, n_states, n_actions = 8, 32, 8
    params = init_ppo_params(k_param, n_states, n_actions)
    slab, meta = pack_ppo_params(params)

    # small-batch path (single grid point)
    x = jax.random.normal(k_x, (B, n_states), dtype=jnp.float32)
    mean, std, value = jax.block_until_ready(ppo_forward(x, slab, meta))
    mean_r, std_r, value_r = ppo_forward_ref(x, params)
    assert mean.shape == (B, n_actions) and std.shape == (B, n_actions)
    assert value.shape == (B, 1)
    assert jnp.allclose(mean, mean_r, atol=1e-4, rtol=1e-4)
    assert jnp.allclose(std, std_r, atol=1e-4, rtol=1e-4)
    assert jnp.allclose(value, value_r, atol=1e-4, rtol=1e-4)

    # larger batch exercising the parallel batch grid (weights stay resident)
    B2 = 256
    x2 = jax.random.normal(k_x2, (B2, n_states), dtype=jnp.float32)
    m2, s2, v2 = jax.block_until_ready(ppo_forward(x2, slab, meta, tile_b=64))
    m2r, s2r, v2r = ppo_forward_ref(x2, params)
    assert jnp.allclose(m2, m2r, atol=1e-4, rtol=1e-4)
    assert jnp.allclose(s2, s2r, atol=1e-4, rtol=1e-4)
    assert jnp.allclose(v2, v2r, atol=1e-4, rtol=1e-4)

    print("KERNEL_OK")
</pallas_src>

<mosaic_0001>
module attributes {stable_mosaic.version = 11 : i64} {
  func.func @kernel(%arg0: i32, %arg1: memref<8x32xf32, #tpu.memory_space<vmem>>, %arg2: memref<480x256xbf16, #tpu.memory_space<vmem>>, %arg3: memref<8x128xf32, #tpu.memory_space<vmem>>) attributes {dimension_semantics = [#tpu.dimension_semantics<parallel>], iteration_bounds = array<i64: 1>, scalar_prefetch = 0 : i64, scratch_operands = 0 : i64, tpu.core_type = #tpu.core_type<tc>, window_params = [{transform_indices = @transform_0, window_bounds = array<i64: 8, 32>}, {pipeline_mode = #tpu.pipeline_mode<synchronous>, transform_indices = @transform_1, window_bounds = array<i64: 480, 256>}, {transform_indices = @transform_2, window_bounds = array<i64: 8, 128>}]} {
    %c0 = arith.constant 0 : index
    %c0_0 = arith.constant 0 : index
    %0 = vector.load %arg1[%c0, %c0_0] : memref<8x32xf32, #tpu.memory_space<vmem>>, vector<8x32xf32>
    %c0_1 = arith.constant 0 : index
    %c0_2 = arith.constant 0 : index
    %1 = vector.load %arg2[%c0_1, %c0_2] : memref<480x256xbf16, #tpu.memory_space<vmem>>, vector<32x256xbf16>
    %2 = arith.extf %1 : vector<32x256xbf16> to vector<32x256xf32>
    %c32 = arith.constant 32 : index
    %c0_3 = arith.constant 0 : index
    %3 = vector.load %arg2[%c32, %c0_3] : memref<480x256xbf16, #tpu.memory_space<vmem>>, vector<1x256xbf16>
    %4 = arith.extf %3 : vector<1x256xbf16> to vector<1x256xf32>
    %cst = arith.constant dense<0.000000e+00> : vector<8x256xf32>
    %5 = tpu.matmul %0, %2, %cst {dimension_numbers = #tpu.dot_dimension_numbers<[1], [0], [0], [1], [0, 0, 1, 1], [], []>} : vector<8x32xf32>, vector<32x256xf32>, vector<8x256xf32> -> vector<8x256xf32>
    %6 = vector.broadcast %4 : vector<1x256xf32> to vector<8x256xf32>
    %7 = arith.addf %5, %6 : vector<8x256xf32>
    %cst_4 = arith.constant 0.000000e+00 : f32
    %8 = vector.broadcast %cst_4 : f32 to vector<8x256xf32>
    %9 = arith.maximumf %7, %8 : vector<8x256xf32>
    %c48 = arith.constant 48 : index
    %c0_5 = arith.constant 0 : index
    %10 = vector.load %arg2[%c48, %c0_5] : memref<480x256xbf16, #tpu.memory_space<vmem>>, vector<256x128xbf16>
    %11 = arith.extf %10 : vector<256x128xbf16> to vector<256x128xf32>
    %c304 = arith.constant 304 : index
    %c0_6 = arith.constant 0 : index
    %12 = vector.load %arg2[%c304, %c0_6] : memref<480x256xbf16, #tpu.memory_space<vmem>>, vector<1x128xbf16>
    %13 = arith.extf %12 : vector<1x128xbf16> to vector<1x128xf32>
    %cst_7 = arith.constant dense<0.000000e+00> : vector<8x128xf32>
    %14 = tpu.matmul %9, %11, %cst_7 {dimension_numbers = #tpu.dot_dimension_numbers<[1], [0], [0], [1], [0, 0, 1, 1], [], []>} : vector<8x256xf32>, vector<256x128xf32>, vector<8x128xf32> -> vector<8x128xf32>
    %15 = vector.broadcast %13 : vector<1x128xf32> to vector<8x128xf32>
    %16 = arith.addf %14, %15 : vector<8x128xf32>
    %cst_8 = arith.constant 0.000000e+00 : f32
    %17 = vector.broadcast %cst_8 : f32 to vector<8x128xf32>
    %18 = arith.maximumf %16, %17 : vector<8x128xf32>
    %c320 = arith.constant 320 : index
    %c0_9 = arith.constant 0 : index
    %19 = vector.load %arg2[%c320, %c0_9] : memref<480x256xbf16, #tpu.memory_space<vmem>>, vector<128x128xbf16>
    %20 = arith.extf %19 : vector<128x128xbf16> to vector<128x128xf32>
    %c448 = arith.constant 448 : index
    %c0_10 = arith.constant 0 : index
    %21 = vector.load %arg2[%c448, %c0_10] : memref<480x256xbf16, #tpu.memory_space<vmem>>, vector<1x128xbf16>
    %22 = arith.extf %21 : vector<1x128xbf16> to vector<1x128xf32>
    %c464 = arith.constant 464 : index
    %c0_11 = arith.constant 0 : index
    %23 = vector.load %arg2[%c464, %c0_11] : memref<480x256xbf16, #tpu.memory_space<vmem>>, vector<1x128xbf16>
    %24 = arith.extf %23 : vector<1x128xbf16> to vector<1x128xf32>
    %25 = tpu.iota {dimensions = array<i32: 1>} : vector<1x128xi32>
    %c8_i32 = arith.constant 8 : i32
    %26 = vector.broadcast %c8_i32 : i32 to vector<1x128xi32>
    %27 = arith.cmpi sge, %25, %26 : vector<1x128xi32>
    %c16_i32 = arith.constant 16 : i32
    %28 = vector.broadcast %c16_i32 : i32 to vector<1x128xi32>
    %29 = arith.cmpi slt, %25, %28 : vector<1x128xi32>
    %30 = arith.andi %27, %29 : vector<1x128xi1>
    %31 = math.exp %24 : vector<1x128xf32>
    %cst_12 = arith.constant 0.000000e+00 : f32
    %32 = vector.broadcast %cst_12 : f32 to vector<1x128xf32>
    %33 = arith.select %30, %31, %32 : vector<1x128xi1>, vector<1x128xf32>
    %cst_13 = arith.constant dense<0.000000e+00> : vector<8x128xf32>
    %34 = tpu.matmul %18, %20, %cst_13 {dimension_numbers = #tpu.dot_dimension_numbers<[1], [0], [0], [1], [0, 0, 1, 1], [], []>} : vector<8x128xf32>, vector<128x128xf32>, vector<8x128xf32> -> vector<8x128xf32>
    %35 = vector.broadcast %22 : vector<1x128xf32> to vector<8x128xf32>
    %36 = arith.addf %34, %35 : vector<8x128xf32>
    %37 = vector.broadcast %33 : vector<1x128xf32> to vector<8x128xf32>
    %38 = arith.addf %36, %37 : vector<8x128xf32>
    %c0_14 = arith.constant 0 : index
    %c0_15 = arith.constant 0 : index
    %39 = vector.load %arg3[%c0_14, %c0_15] : memref<8x128xf32, #tpu.memory_space<vmem>>, vector<8x128xf32>
    tpu.vector_store %arg3[%c0_14, %c0_15], %38 {strides = array<i32>} : memref<8x128xf32, #tpu.memory_space<vmem>>, vector<8x128xf32>,
    return
  }
  func.func @transform_0(%arg0: i32) -> (i32, i32) {
    %c0_i32 = arith.constant 0 : i32
    %c0_i32_0 = arith.constant 0 : i32
    return %arg0, %c0_i32 : i32, i32
  }
  func.func @transform_1(%arg0: i32) -> (i32, i32) {
    %c0_i32 = arith.constant 0 : i32
    %c0_i32_0 = arith.constant 0 : i32
    %c0_i32_1 = arith.constant 0 : i32
    return %c0_i32, %c0_i32_0 : i32, i32
  }
  func.func @transform_2(%arg0: i32) -> (i32, i32) {
    %c0_i32 = arith.constant 0 : i32
    %c0_i32_0 = arith.constant 0 : i32
    return %arg0, %c0_i32 : i32, i32
  }
}

</mosaic_0001>

<bundles_post_ra>
// kernel: tpu_custom_call.1
= control target key start
LH: loop header
LB: loop body
LE: loop exit
PB: predicated region body
PF: predicated region fallthrough
CT: control target
= control target key end

     0   :  { %7 = vsyncpa [#allocation3], 0  ;;  %s780_s0 = inlined_call_operand.hbm [shape: f32[8,32], index: 0, kind: input, shape index: {}]   ;;  %s781_s1 = inlined_call_operand.hbm [shape: bf16[480,256], index: 1, kind: input, shape index: {}]   ;;  %s782_s2 = inlined_call_operand.hbm [shape: f32[8,128], index: 2, kind: output, shape index: {}]  }
   0x1   :  { %8 = vsyncpa [#allocation6], 0 }
   0x2   :  { %9 = vsyncpa [#allocation4], 0  ;;  %s712_s9 = smov [#allocation2]   ;;  %s713_s11 = smov [#allocation5]  }
   0x3   :  { %s16_s10 = sshll.u32 %s712_s9, 4  ;;  %s25_s12 = sshll.u32 %s713_s11, 4  ;;  %s17_s10 = int_to_ptr.vmem [resolvable:$true] %s16_s10  ;;  %s735_s12 = int_to_ptr.vmem [resolvable:$true] %s25_s12 }
   0x4   :  { %s640_s15 = scalar_lea.hbm %s780_s0, 128 }
   0x5   :  { %p641_p0 = scmp.ne.s32.totalorder %s780_s0, %s640_s15  ;;  %p644_p1 = scmp.lt.u32.totalorder %s640_s15, %s780_s0 }
   0x7   :  { %p646_p2 = pnand %p644_p1, %p641_p0 }
   0x9   :  { %649 = shalt.err (!%p646_p2)
}
   0xa   :  { %s650_s20 = scalar_lea.vmem %s17_s10, 128  ;;  %p655_p4 = scmp.lt.s32.totalorder %s17_s10, %s17_s10 }
   0xb   :  { %p651_p3 = scmp.ne.s32.totalorder %s17_s10, %s650_s20  ;;  %p656_p5 = scmp.lt.s32.totalorder %s650_s20, %s650_s20 }
   0xd   :  { %p657_p6 = por %p656_p5, %p655_p4 }
   0xf   :  { %p658_p7 = pnand %p657_p6, %p651_p3 }
  0x11   :  { %661 = shalt.err (!%p658_p7)
}
  0x12   :  { %19 = dma.hbm_to_vmem [thread:$0]  %s780_s0, 128, %s17_s10, [#allocation3]  }
  0x13   :  { %s662_s25 = scalar_lea.hbm %s781_s1, 7680 }
  0x14   :  { %p663_p8 = scmp.ne.s32.totalorder %s781_s1, %s662_s25  ;;  %p666_p9 = scmp.lt.u32.totalorder %s662_s25, %s781_s1 }
  0x16   :  { %p668_p10 = pnand %p666_p9, %p663_p8 }
  0x18   :  { %671 = shalt.err (!%p668_p10)
}
  0x19   :  { %s672_s30 = scalar_lea.vmem %s735_s12, 7680  ;;  %p677_p12 = scmp.lt.s32.totalorder %s735_s12, %s735_s12 }
  0x1a   :  { %p673_p11 = scmp.ne.s32.totalorder %s735_s12, %s672_s30  ;;  %p678_p13 = scmp.lt.s32.totalorder %s672_s30, %s672_s30 }
  0x1c   :  { %p679_p0 = por %p678_p13, %p677_p12 }
  0x1e   :  { %p680_p1 = pnand %p679_p0, %p673_p11 }
  0x20   :  { %683 = shalt.err (!%p680_p1)
}
  0x21   :  { %s714_s0 = smov 128   ;;  %s715_s3 = smov 8  }
  0x22   :  { %31 = dma.hbm_to_vmem [thread:$0]  %s781_s1, 7680, %s735_s12, [#allocation6], %s714_s0, %s714_s0, %s715_s3  }
  0x23   :  { %706 = dma.done.wait [#allocation3], 128  }
  0x24   :  { %707 = vsyncadd [#allocation3], 4294967168 }
  0x25   :  { %708 = dma.done.wait [#allocation6], 7680  }
  0x26   :  { %709 = vsyncadd [#allocation6], 4294959616  ;;  %v716_v0 = vmov 0.0   ;;  %v608_v1 = vld [vmem:[#allocation5 + $0x4] ss:$8 sps:$4 sm:$0xff]   ;;  %vm62_vm0 = vcmask 261120   ;;  %v54_v29 = vlaneseq }
  0x27   :  { %130 = vmatprep.mubr.f32.mxu0 %v716_v0  ;;  %v610_v2 = vld [vmem:[#allocation5] ss:$8 sps:$4 sm:$0xff]   ;;  %509 = vmatprep.subr.bf16.mxu0 %v608_v1  ;;  %v611_v3 = vld [vmem:[#allocation5 + $0x14] ss:$8 sps:$4 sm:$0xff]   ;;  %v613_v4 = vld [vmem:[#allocation5 + $0x10] ss:$8 sps:$4 sm:$0xff]  }
  0x28   :  { %511 = vmatpush1.bf16.msra.mxu0 %v610_v2  ;;  %v614_v5 = vld [vmem:[#allocation5 + $0xb0] ss:$8 sps:$4 sm:$0xff]   ;;  %v616_v8 = vld [vmem:[#allocation5 + $0xc0] ss:$8 sps:$4 sm:$0xff]   ;;  %v717_v23 = vmov 0.0|0.0   ;;  %v55_v30 = vshrl.u32 %v54_v29, 7 }
  0x29   :  { %513 = vmatprep.subr.bf16.mxu0 %v611_v3  ;;  %v615_v6 = vld [vmem:[#allocation5 + $0x30] ss:$8 sps:$4 sm:$0xff]   ;;  %517 = vmatprep.subr.bf16.mxu1 %v614_v5  ;;  %v617_v9 = vld [vmem:[#allocation5 + $0x40] ss:$8 sps:$4 sm:$0xff]   ;;  %vm718_vm1 = vmmov 0   ;;  %v317_v56 = vand.u32 127, %v54_v29 }
  0x2a   :  { %v38_v7 = vld [vmem:[#allocation2] sm:$0xff]  ;;  %519 = vmatpush3.bf16.msra.mxu1 %v615_v6  ;;  %v620_v12 = vld [vmem:[#allocation5 + $0xe0] ss:$8 sps:$4 sm:$0xff]   ;;  %v56_v33 = vsub.s32 0, %v55_v30  ;;  %v203_v45 = vld [vmem:[#allocation5 + $0x130] sm:$0x1] }
  0x2b   :  { %521 = vmatprep.subr.bf16.mxu1 %v616_v8  ;;  %v618_v10 = vld [vmem:[#allocation5 + $0xd0] ss:$8 sps:$4 sm:$0xff]   ;;  %v621_v13 = vld [vmem:[#allocation5 + $0x60] ss:$8 sps:$4 sm:$0xff]   ;;  %v204_v46 = vunpack.c.l.bf16 %v203_v45  ;;  %vm318_vm2 = vcmp.ge.s32.totalorder %v317_v56, 8  ;;  %vm319_vm3 = vcmp.lt.s32.totalorder %v317_v56, 16 }
  0x2c   :  { %515 = vmatpush1.bf16.msra.mxu0 %v613_v4  ;;  %v619_v11 = vld [vmem:[#allocation5 + $0x50] ss:$8 sps:$4 sm:$0xff]   ;;  %v624_v16 = vld [vmem:[#allocation5 + $0x100] ss:$8 sps:$4 sm:$0xff]   ;;  %vm320_vm4 = vmand %vm318_vm2, %vm319_vm3  ;;  %s719_s1 = smov [#allocation7]  }
  0x2d   :  { %v622_v14 = vld [vmem:[#allocation5 + $0xf0] ss:$8 sps:$4 sm:$0xff]   ;;  %v625_v17 = vld [vmem:[#allocation5 + $0x80] ss:$8 sps:$4 sm:$0xff]   ;;  %548 = vmatprep.subr.bf16.mxu0 %v717_v23  ;;  %v208_v48 = vrot.slane %v204_v46, %v56_v33  ;;  %s410_s6 = sshll.u32 %s719_s1, 4  ;;  %s411_s6 = int_to_ptr.vmem [resolvable:$true] %s410_s6 }
  0x2e   :  { %523 = vmatpush3.bf16.msra.mxu1 %v617_v9  ;;  %v623_v15 = vld [vmem:[#allocation5 + $0x70] ss:$8 sps:$4 sm:$0xff]   ;;  %v628_v20 = vld [vmem:[#allocation5 + $0x120] ss:$8 sps:$4 sm:$0xff]   ;;  %s684_s7 = scalar_lea.vmem %s411_s6, 128  ;;  %p689_p3 = scmp.lt.s32.totalorder %s411_s6, %s411_s6 }
  0x2f   :  { %420 = vmatmul.mubr.msk.f32.vlgmr.msra.gmra.mrb[0].mxu0 %vm62_vm0, %v38_v7  ;;  %525 = vmatprep.subr.bf16.mxu1 %v618_v10  ;;  %v626_v18 = vld [vmem:[#allocation5 + $0x110] ss:$8 sps:$4 sm:$0xff]   ;;  %v629_v21 = vld [vmem:[#allocation5 + $0xa0] ss:$8 sps:$4 sm:$0xff]   ;;  %p685_p2 = scmp.ne.s32.totalorder %s411_s6, %s684_s7  ;;  %p690_p4 = scmp.lt.s32.totalorder %s684_s7, %s684_s7 }
  0x30   :  { %v627_v19 = vld [vmem:[#allocation5 + $0x90] ss:$8 sps:$4 sm:$0xff]   ;;  %v630_v22 = vld [vmem:[#allocation5 + $0x140] ss:$8 sps:$4 sm:$0xff]   ;;  %505 = vmatprep.mubr.msk.f32.mxu0 %vm718_vm1, %v716_v0 }
  0x31   :  { %550 = vmatpush3.bf16.msra.mxu0 %v630_v22  ;;  %v631_v24 = vld [vmem:[#allocation5 + $0x150] ss:$8 sps:$4 sm:$0xff]   ;;  %v632_v25 = vld [vmem:[#allocation5 + $0x160] ss:$8 sps:$4 sm:$0xff]   ;;  %p691_p5 = por %p690_p4, %p689_p3 }
  0x32   :  { %527 = vmatpush3.bf16.msra.mxu1 %v619_v11  ;;  %551 = vmatprep.subr.bf16.mxu0 %v717_v23  ;;  %v633_v26 = vld [vmem:[#allocation5 + $0x170] ss:$8 sps:$4 sm:$0xff]   ;;  %v634_v27 = vld [vmem:[#allocation5 + $0x180] ss:$8 sps:$4 sm:$0xff]  }
  0x33   :  { %529 = vmatprep.subr.bf16.mxu1 %v620_v12  ;;  %v635_v28 = vld [vmem:[#allocation5 + $0x190] ss:$8 sps:$4 sm:$0xff]   ;;  %v51_v31 = vld [vmem:[#allocation5 + $0x20] sm:$0x11]  ;;  %p692_p6 = pnand %p691_p5, %p685_p2 }
  0x34   :  { %v52_v32 = vunpack.c.l.bf16 %v51_v31  ;;  %v53_v34 = vunpack.c.h.bf16 %v51_v31  ;;  %v636_v43 = vld [vmem:[#allocation5 + $0x1a0] ss:$8 sps:$4 sm:$0xff]   ;;  %v637_v44 = vld [vmem:[#allocation5 + $0x1b0] ss:$8 sps:$4 sm:$0xff]  }
  0x35   :  { %553 = vmatpush3.bf16.msra.mxu0 %v631_v24  ;;  %v314_v53 = vld [vmem:[#allocation5 + $0x1d0] sm:$0x1]  ;;  %v312_v57 = vld [vmem:[#allocation5 + $0x1c0] sm:$0x1] }
  0x36   :  { %531 = vmatpush3.bf16.msra.mxu1 %v621_v13  ;;  %554 = vmatprep.subr.bf16.mxu0 %v717_v23  ;;  %v57_v35 = vrot.slane %v52_v32, %v56_v33  ;;  %v61_v36 = vrot.slane %v53_v34, %v56_v33  ;;  %v315_v54 = vunpack.c.l.bf16 %v314_v53  ;;  %v313_v59 = vunpack.c.l.bf16 %v312_v57 }
  0x37   :  { %533 = vmatprep.subr.bf16.mxu1 %v622_v14 }
  0x38   :  { %v321_v55 = vmul.f32 1.442695, %v315_v54  ;;  %v327_v61 = vrot.slane %v313_v59, %v56_v33 }
  0x39   :  { %556 = vmatpush3.bf16.msra.mxu0 %v632_v25 }
  0x3a   :  { %535 = vmatpush3.bf16.msra.mxu1 %v623_v15  ;;  %557 = vmatprep.subr.bf16.mxu0 %v717_v23  ;;  %638 = vpow2.f32 %v321_v55 }
  0x3b   :  { %537 = vmatprep.subr.bf16.mxu1 %v624_v16 }
  0x3d   :  { %559 = vmatpush3.bf16.msra.mxu0 %v633_v26 }
  0x3e   :  { %539 = vmatpush3.bf16.msra.mxu1 %v625_v17  ;;  %560 = vmatprep.subr.bf16.mxu0 %v717_v23 }
  0x3f   :  { %541 = vmatprep.subr.bf16.mxu1 %v626_v18 }
  0x41   :  { %562 = vmatpush3.bf16.msra.mxu0 %v634_v27 }
  0x42   :  { %543 = vmatpush3.bf16.msra.mxu1 %v627_v19  ;;  %563 = vmatprep.subr.bf16.mxu0 %v717_v23 }
  0x43   :  { %545 = vmatprep.subr.bf16.mxu1 %v628_v20 }
  0x44   :  { %v639_v58 = vpop.eup %638 }
  0x45   :  { %565 = vmatpush3.bf16.msra.mxu0 %v635_v28  ;;  %v323_v60 = vsel %vm320_vm4, %v639_v58, 0.0 }
  0x46   :  { %547 = vmatpush3.bf16.msra.mxu1 %v629_v21  ;;  %566 = vmatprep.subr.bf16.mxu0 %v717_v23  ;;  %v401_v62 = vrot.slane %v323_v60, %v56_v33 }
  0x49   :  { %568 = vmatpush3.bf16.msra.mxu0 %v636_v43 }
  0x4a   :  { %569 = vmatprep.subr.bf16.mxu0 %v717_v23 }
  0x4d   :  { %571 = vmatpush3.bf16.msra.mxu0 %v637_v44 }
 0x102   :  { %v132_v37 = vpop.f32.mrb[0].mxu0 }
 0x103   :  { %v133_v38 = vadd.f32 %v132_v37, %v57_v35  ;;  %v134_v39 = vpop.f32.mrb[1].mxu0 }
 0x104   :  { %v135_v40 = vadd.f32 %v134_v39, %v61_v36 }
 0x105   :  { %v137_v42 = vmax.f32 %v133_v38, 0.0 }
 0x106   :  { %v138_v41 = vmax.f32 %v135_v40, 0.0 }
 0x108   :  { %273 = vmatprep.mubr.f32.mxu1 %v138_v41 }
 0x109   :  { %274 = vmatmul.mubr.f32.vlgmr.msra.gmra.mrb[0].mxu1 %v137_v42 }
 0x1dc   :  { %v453_v47 = vpop.f32.mrb[0].mxu1 }
 0x1dd   :  { %v454_v49 = vpop.f32.mrb[1].mxu1 }
 0x1de   :  { %v455_v50 = vadd.f32 %v454_v49, %v453_v47 }
 0x1e0   :  { %v276_v51 = vadd.f32 %v455_v50, %v208_v48 }
 0x1e2   :  { %v279_v52 = vmax.f32 %v276_v51, 0.0 }
 0x1e4   :  { %506 = vmatmul.mubr.f32.vlgmr.msra.gmra.mrb[2].mxu0 %v279_v52 }
 0x2b7   :  { %v394_v63 = vpop.f32.mrb[2].mxu0 }
 0x2b8   :  { %v395_v0 = vadd.f32 %v394_v63, %v327_v61  ;;  %v507_v1 = vpop.f32.mrb[3].mxu0 }
 0x2ba   :  { %v402_v2 = vadd.f32 %v401_v62, %v395_v0 }
 0x2bc   :  { %403 = vst [vmem:[#allocation7] sm:$0xff] %v402_v2 }
 0x2bd   :  { %695 = shalt.err (!%p692_p6)
}
 0x2be   :  { %s696_s10 = scalar_lea.hbm %s782_s2, 128 }
 0x2bf   :  { %p697_p7 = scmp.ne.s32.totalorder %s782_s2, %s696_s10  ;;  %p700_p8 = scmp.lt.u32.totalorder %s696_s10, %s782_s2 }
 0x2c1   :  { %p702_p9 = pnand %p700_p8, %p697_p7 }
 0x2c3   :  { %705 = shalt.err (!%p702_p9)
}
 0x2c4   :  { %413 = dma.vmem_to_hbm [thread:$0]  %s411_s6, 128, %s782_s2, [#allocation4]  }
 0x2c5   :  { %710 = dma.done.wait [#allocation4], 128  }
 0x2c6   :  { %711 = vsyncadd [#allocation4], 4294967168 }
 0x2c7   :  { %417 = vsyncpa [#allocation3], 1 }
 0x2c8   :  { %418 = vsyncpa [#allocation6], 1 }
 0x2c9   :  { %419 = vsyncpa [#allocation4], 1 }

</bundles_post_ra>
